<compile_context>
chip_gen: v6e
topology: v6e:2x2x1
jax: 0.10.0
libtpu: 0.0.40
codegen_flags: <defaults>
</compile_context>

<pallas_src>
import jax
import jax.numpy as jnp
from jax import lax
from jax.experimental import pallas as pl
from jax.experimental.pallas import tpu as pltpu


# ---------------------------------------------------------------------------
# Fused kernel:  out_i[n, o, p] = sum_c We_i[o, c] * x[n, c, p] + be_i[o]
#   x_ref : (N, Cin, P)           input pixels, lane dim = P
#   w_ref : (3*Cin, Cout, P)      conv4-folded weights, lane-pre-broadcast
#                                 row (i*Cin + c) = We_i[:, c] broadcast to P
#   b_ref : (3, Cout, P)          conv4-folded biases, lane-pre-broadcast
#   o*_ref: (N, Cout, P)          one lane-dense slab per branch
# ---------------------------------------------------------------------------
def _fused_branches_kernel(x_ref, w_ref, b_ref, o1_ref, o2_ref, o3_ref):
    x = x_ref[...]                          # (N, Cin, P)
    w = w_ref[...]                          # (3*Cin, Cout, P)
    b = b_ref[...]                          # (3, Cout, P)
    cin = x.shape[1]                        # static -> loops unroll at trace time
    for i, o_ref in enumerate((o1_ref, o2_ref, o3_ref)):
        # exact f32 VPU FMAs; only x needs a sublane broadcast (N,1,P)->(N,Cout,P)
        acc = b[i][None, :, :] + w[i * cin + 0][None, :, :] * x[:, 0:1, :]
        for c in range(1, cin):
            acc = acc + w[i * cin + c][None, :, :] * x[:, c:c + 1, :]
        o_ref[...] = acc                    # full unmasked store, 256-lane minor dim


def fold_params(params, num_pixels):
    """One-time prep (run OUTSIDE jit): fold conv4 into each branch (no
    nonlinearity in between) and lay the folded weights/biases out in the
    kernel's lane-pre-broadcast layout."""
    (W1, b1, W2, b2, W3, b3, W4, b4) = params
    Cout, Cin = W1.shape[0], W1.shape[1]
    hp = lax.Precision.HIGHEST
    W4m = W4[:, :, 0, 0]                                    # (Cout, Cout)

    def fold(Wi, bi):
        Wim = Wi[:, :, 0, 0]                                # (Cout, Cin)
        We = jnp.matmul(W4m, Wim, precision=hp)             # (Cout, Cin)
        be = jnp.matmul(W4m, bi, precision=hp) + b4         # (Cout,)
        return We, be

    Ws, bs = zip(*(fold(Wi, bi) for (Wi, bi) in ((W1, b1), (W2, b2), (W3, b3))))
    W_all = jnp.stack(Ws)                                   # (3, Cout, Cin)
    b_all = jnp.stack(bs)                                   # (3, Cout)

    # (3, Cin, Cout) -> (3*Cin, Cout) with row r = i*Cin + c  ==  We_i[:, c]
    W_rows = jnp.transpose(W_all, (0, 2, 1)).reshape(3 * Cin, Cout)
    # lane-pre-broadcast so the kernel has zero in-kernel lane broadcasts
    W_k = jnp.broadcast_to(W_rows[:, :, None],
                           (3 * Cin, Cout, num_pixels)).astype(jnp.float32)
    b_k = jnp.broadcast_to(b_all[:, :, None],
                           (3, Cout, num_pixels)).astype(jnp.float32)
    return W_k, b_k


def forward(x_nchw, w_k, b_k):
    """x_nchw: (N, Cin, H, W);  w_k/b_k from fold_params().
    Returns (x1, x2, x3) in NCHW, matching conv4(conv_i(x)) of the module."""
    N, Cin, H, W = x_nchw.shape
    P = H * W
    Cout = w_k.shape[1]
    x_flat = x_nchw.reshape(N, Cin, P)       # contiguous reshape: no transpose

    cost = pl.CostEstimate(
        flops=2 * 3 * Cout * Cin * N * P,
        transcendentals=0,
        bytes_accessed=4 * (x_flat.size + w_k.size + b_k.size + 3 * N * Cout * P),
    )

    out_sds = jax.ShapeDtypeStruct((N, Cout, P), jnp.float32)
    o1, o2, o3 = pl.pallas_call(
        _fused_branches_kernel,
        out_shape=(out_sds, out_sds, out_sds),
        in_specs=[
            pl.BlockSpec(memory_space=pltpu.MemorySpace.VMEM),
            pl.BlockSpec(memory_space=pltpu.MemorySpace.VMEM),
            pl.BlockSpec(memory_space=pltpu.MemorySpace.VMEM),
        ],
        out_specs=(
            pl.BlockSpec(memory_space=pltpu.MemorySpace.VMEM),
            pl.BlockSpec(memory_space=pltpu.MemorySpace.VMEM),
            pl.BlockSpec(memory_space=pltpu.MemorySpace.VMEM),
        ),
        cost_estimate=cost,
        # TODO(synk): if N/H/W ever grow, add grid=(N,) with
        # dimension_semantics=("parallel",) (dual-TC on v7x) and a pixel-tiled
        # BlockSpec to respect v7x's smaller VMEM; unnecessary at this size.
    )(x_flat, w_k, b_k)

    # contiguous reshapes back to NCHW -- no transpose, no slice
    return (o1.reshape(N, Cout, H, W),
            o2.reshape(N, Cout, H, W),
            o3.reshape(N, Cout, H, W))


def ref_forward(x_nchw, params):
    """Pure-JAX reference with lax convolutions (NCHW / OIHW, like PyTorch)."""
    (W1, b1, W2, b2, W3, b3, W4, b4) = params
    dn = ('NCHW', 'OIHW', 'NCHW')
    hp = lax.Precision.HIGHEST

    def conv(x, Wc, bc):
        y = lax.conv_general_dilated(x, Wc, (1, 1), 'VALID',
                                     dimension_numbers=dn, precision=hp)
        return y + bc[None, :, None, None]

    x1 = conv(x_nchw, W1, b1)
    x2 = conv(x_nchw, W2, b2)
    x3 = conv(x_nchw, W3, b3)
    return conv(x1, W4, b4), conv(x2, W4, b4), conv(x3, W4, b4)


if __name__ == "__main__":
    key = jax.random.PRNGKey(0)

    # Deterministic parameters, exactly as the module's __init__ builds them:
    # create_conv(cin, cout, kernel=1, weight_init=1, bias_init=-2),
    # then weight.data[i] += i for conv1, conv2 and conv4 (not conv3).
    ch = jnp.arange(16, dtype=jnp.float32)[:, None, None, None]
    W1 = jnp.ones((16, 2, 1, 1), jnp.float32) + ch
    b1 = jnp.full((16,), -2.0, jnp.float32)
    W2 = jnp.ones((16, 2, 1, 1), jnp.float32) + ch
    b2 = jnp.full((16,), -2.0, jnp.float32)
    W3 = jnp.ones((16, 2, 1, 1), jnp.float32)
    b3 = jnp.full((16,), -2.0, jnp.float32)
    W4 = jnp.ones((16, 16, 1, 1), jnp.float32) + ch
    b4 = jnp.full((16,), -2.0, jnp.float32)
    params = (W1, b1, W2, b2, W3, b3, W4, b4)

    N, Cin, H, W = 2, 2, 16, 16
    x = jax.random.normal(key, (N, Cin, H, W), jnp.float32)   # NCHW, like PyTorch

    # one-time, OUTSIDE jit: fold conv4 and pack weights into kernel layout
    w_k, b_k = jax.block_until_ready(fold_params(params, H * W))

    fwd = jax.jit(forward)
    x1, x2, x3 = jax.block_until_ready(fwd(x, w_k, b_k))
    assert x1.shape == (N, 16, H, W), x1.shape
    assert x2.shape == (N, 16, H, W), x2.shape
    assert x3.shape == (N, 16, H, W), x3.shape

    r1, r2, r3 = ref_forward(x, params)
    for name, got, want in (("x1", x1, r1), ("x2", x2, r2), ("x3", x3, r3)):
        if not bool(jnp.allclose(got, want, rtol=2e-3, atol=2e-2)):
            err = float(jnp.max(jnp.abs(got - want)))
            raise AssertionError(f"{name} mismatch vs reference, max abs err = {err}")
    print("KERNEL_OK")
</pallas_src>

<mosaic_0001>
module attributes {stable_mosaic.version = 11 : i64} {
  func.func @_fused_branches_kernel(%arg0: memref<2x2x256xf32, #tpu.memory_space<vmem>>, %arg1: memref<6x16x256xf32, #tpu.memory_space<vmem>>, %arg2: memref<3x16x256xf32, #tpu.memory_space<vmem>>, %arg3: memref<2x16x256xf32, #tpu.memory_space<vmem>>, %arg4: memref<2x16x256xf32, #tpu.memory_space<vmem>>, %arg5: memref<2x16x256xf32, #tpu.memory_space<vmem>>) attributes {dimension_semantics = [], scalar_prefetch = 0 : i64, scratch_operands = 0 : i64, tpu.core_type = #tpu.core_type<tc>} {
    %c0 = arith.constant 0 : index
    %c0_0 = arith.constant 0 : index
    %c0_1 = arith.constant 0 : index
    %0 = vector.load %arg0[%c0, %c0_0, %c0_1] : memref<2x2x256xf32, #tpu.memory_space<vmem>>, vector<2x2x256xf32>
    %c0_2 = arith.constant 0 : index
    %c0_3 = arith.constant 0 : index
    %c0_4 = arith.constant 0 : index
    %1 = vector.load %arg1[%c0_2, %c0_3, %c0_4] : memref<6x16x256xf32, #tpu.memory_space<vmem>>, vector<6x16x256xf32>
    %c0_5 = arith.constant 0 : index
    %c0_6 = arith.constant 0 : index
    %c0_7 = arith.constant 0 : index
    %2 = vector.load %arg2[%c0_5, %c0_6, %c0_7] : memref<3x16x256xf32, #tpu.memory_space<vmem>>, vector<3x16x256xf32>
    %3 = vector.extract_strided_slice %2 {offsets = [0, 0, 0], sizes = [1, 16, 256], strides = [1, 1, 1]} : vector<3x16x256xf32> to vector<1x16x256xf32>
    %4 = vector.shape_cast %3 : vector<1x16x256xf32> to vector<16x256xf32>
    %5 = vector.shape_cast %4 : vector<16x256xf32> to vector<1x16x256xf32>
    %6 = vector.extract_strided_slice %1 {offsets = [0, 0, 0], sizes = [1, 16, 256], strides = [1, 1, 1]} : vector<6x16x256xf32> to vector<1x16x256xf32>
    %7 = vector.shape_cast %6 : vector<1x16x256xf32> to vector<16x256xf32>
    %8 = vector.shape_cast %7 : vector<16x256xf32> to vector<1x16x256xf32>
    %9 = vector.extract_strided_slice %0 {offsets = [0, 0, 0], sizes = [2, 1, 256], strides = [1, 1, 1]} : vector<2x2x256xf32> to vector<2x1x256xf32>
    %10 = vector.broadcast %8 : vector<1x16x256xf32> to vector<2x16x256xf32>
    %11 = vector.broadcast %9 : vector<2x1x256xf32> to vector<2x16x256xf32>
    %12 = arith.mulf %10, %11 : vector<2x16x256xf32>
    %13 = vector.broadcast %5 : vector<1x16x256xf32> to vector<2x16x256xf32>
    %14 = arith.addf %13, %12 : vector<2x16x256xf32>
    %15 = vector.extract_strided_slice %1 {offsets = [1, 0, 0], sizes = [1, 16, 256], strides = [1, 1, 1]} : vector<6x16x256xf32> to vector<1x16x256xf32>
    %16 = vector.shape_cast %15 : vector<1x16x256xf32> to vector<16x256xf32>
    %17 = vector.shape_cast %16 : vector<16x256xf32> to vector<1x16x256xf32>
    %18 = vector.extract_strided_slice %0 {offsets = [0, 1, 0], sizes = [2, 1, 256], strides = [1, 1, 1]} : vector<2x2x256xf32> to vector<2x1x256xf32>
    %19 = vector.broadcast %17 : vector<1x16x256xf32> to vector<2x16x256xf32>
    %20 = vector.broadcast %18 : vector<2x1x256xf32> to vector<2x16x256xf32>
    %21 = arith.mulf %19, %20 : vector<2x16x256xf32>
    %22 = arith.addf %14, %21 : vector<2x16x256xf32>
    %c0_8 = arith.constant 0 : index
    %c0_9 = arith.constant 0 : index
    %c0_10 = arith.constant 0 : index
    %23 = vector.load %arg3[%c0_8, %c0_9, %c0_10] : memref<2x16x256xf32, #tpu.memory_space<vmem>>, vector<2x16x256xf32>
    tpu.vector_store %arg3[%c0_8, %c0_9, %c0_10], %22 {strides = array<i32>} : memref<2x16x256xf32, #tpu.memory_space<vmem>>, vector<2x16x256xf32>,
    %24 = vector.extract_strided_slice %2 {offsets = [1, 0, 0], sizes = [1, 16, 256], strides = [1, 1, 1]} : vector<3x16x256xf32> to vector<1x16x256xf32>
    %25 = vector.shape_cast %24 : vector<1x16x256xf32> to vector<16x256xf32>
    %26 = vector.shape_cast %25 : vector<16x256xf32> to vector<1x16x256xf32>
    %27 = vector.extract_strided_slice %1 {offsets = [2, 0, 0], sizes = [1, 16, 256], strides = [1, 1, 1]} : vector<6x16x256xf32> to vector<1x16x256xf32>
    %28 = vector.shape_cast %27 : vector<1x16x256xf32> to vector<16x256xf32>
    %29 = vector.shape_cast %28 : vector<16x256xf32> to vector<1x16x256xf32>
    %30 = vector.extract_strided_slice %0 {offsets = [0, 0, 0], sizes = [2, 1, 256], strides = [1, 1, 1]} : vector<2x2x256xf32> to vector<2x1x256xf32>
    %31 = vector.broadcast %29 : vector<1x16x256xf32> to vector<2x16x256xf32>
    %32 = vector.broadcast %30 : vector<2x1x256xf32> to vector<2x16x256xf32>
    %33 = arith.mulf %31, %32 : vector<2x16x256xf32>
    %34 = vector.broadcast %26 : vector<1x16x256xf32> to vector<2x16x256xf32>
    %35 = arith.addf %34, %33 : vector<2x16x256xf32>
    %36 = vector.extract_strided_slice %1 {offsets = [3, 0, 0], sizes = [1, 16, 256], strides = [1, 1, 1]} : vector<6x16x256xf32> to vector<1x16x256xf32>
    %37 = vector.shape_cast %36 : vector<1x16x256xf32> to vector<16x256xf32>
    %38 = vector.shape_cast %37 : vector<16x256xf32> to vector<1x16x256xf32>
    %39 = vector.extract_strided_slice %0 {offsets = [0, 1, 0], sizes = [2, 1, 256], strides = [1, 1, 1]} : vector<2x2x256xf32> to vector<2x1x256xf32>
    %40 = vector.broadcast %38 : vector<1x16x256xf32> to vector<2x16x256xf32>
    %41 = vector.broadcast %39 : vector<2x1x256xf32> to vector<2x16x256xf32>
    %42 = arith.mulf %40, %41 : vector<2x16x256xf32>
    %43 = arith.addf %35, %42 : vector<2x16x256xf32>
    %c0_11 = arith.constant 0 : index
    %c0_12 = arith.constant 0 : index
    %c0_13 = arith.constant 0 : index
    %44 = vector.load %arg4[%c0_11, %c0_12, %c0_13] : memref<2x16x256xf32, #tpu.memory_space<vmem>>, vector<2x16x256xf32>
    tpu.vector_store %arg4[%c0_11, %c0_12, %c0_13], %43 {strides = array<i32>} : memref<2x16x256xf32, #tpu.memory_space<vmem>>, vector<2x16x256xf32>,
    %45 = vector.extract_strided_slice %2 {offsets = [2, 0, 0], sizes = [1, 16, 256], strides = [1, 1, 1]} : vector<3x16x256xf32> to vector<1x16x256xf32>
    %46 = vector.shape_cast %45 : vector<1x16x256xf32> to vector<16x256xf32>
    %47 = vector.shape_cast %46 : vector<16x256xf32> to vector<1x16x256xf32>
    %48 = vector.extract_strided_slice %1 {offsets = [4, 0, 0], sizes = [1, 16, 256], strides = [1, 1, 1]} : vector<6x16x256xf32> to vector<1x16x256xf32>
    %49 = vector.shape_cast %48 : vector<1x16x256xf32> to vector<16x256xf32>
    %50 = vector.shape_cast %49 : vector<16x256xf32> to vector<1x16x256xf32>
    %51 = vector.extract_strided_slice %0 {offsets = [0, 0, 0], sizes = [2, 1, 256], strides = [1, 1, 1]} : vector<2x2x256xf32> to vector<2x1x256xf32>
    %52 = vector.broadcast %50 : vector<1x16x256xf32> to vector<2x16x256xf32>
    %53 = vector.broadcast %51 : vector<2x1x256xf32> to vector<2x16x256xf32>
    %54 = arith.mulf %52, %53 : vector<2x16x256xf32>
    %55 = vector.broadcast %47 : vector<1x16x256xf32> to vector<2x16x256xf32>
    %56 = arith.addf %55, %54 : vector<2x16x256xf32>
    %57 = vector.extract_strided_slice %1 {offsets = [5, 0, 0], sizes = [1, 16, 256], strides = [1, 1, 1]} : vector<6x16x256xf32> to vector<1x16x256xf32>
    %58 = vector.shape_cast %57 : vector<1x16x256xf32> to vector<16x256xf32>
    %59 = vector.shape_cast %58 : vector<16x256xf32> to vector<1x16x256xf32>
    %60 = vector.extract_strided_slice %0 {offsets = [0, 1, 0], sizes = [2, 1, 256], strides = [1, 1, 1]} : vector<2x2x256xf32> to vector<2x1x256xf32>
    %61 = vector.broadcast %59 : vector<1x16x256xf32> to vector<2x16x256xf32>
    %62 = vector.broadcast %60 : vector<2x1x256xf32> to vector<2x16x256xf32>
    %63 = arith.mulf %61, %62 : vector<2x16x256xf32>
    %64 = arith.addf %56, %63 : vector<2x16x256xf32>
    %c0_14 = arith.constant 0 : index
    %c0_15 = arith.constant 0 : index
    %c0_16 = arith.constant 0 : index
    %65 = vector.load %arg5[%c0_14, %c0_15, %c0_16] : memref<2x16x256xf32, #tpu.memory_space<vmem>>, vector<2x16x256xf32>
    tpu.vector_store %arg5[%c0_14, %c0_15, %c0_16], %64 {strides = array<i32>} : memref<2x16x256xf32, #tpu.memory_space<vmem>>, vector<2x16x256xf32>,
    return
  }
}

</mosaic_0001>

<bundles_post_ra>
// kernel: forward.1
= control target key start
LH: loop header
LB: loop body
LE: loop exit
PB: predicated region body
PF: predicated region fallthrough
CT: control target
= control target key end

     0   :  { %11 = vsyncpa [#allocation3], 0  ;;  %s521_s0 = inlined_call_operand.vmem [shape: f32[2,2,256], index: 0, kind: input, shape index: {}]   ;;  %s522_s1 = inlined_call_operand.hbm [shape: f32[6,16,256], index: 1, kind: input, shape index: {}]   ;;  %s523_s2 = inlined_call_operand.hbm [shape: f32[3,16,256], index: 2, kind: input, shape index: {}]   ;;  %s524_s3 = inlined_call_operand.vmem [shape: f32[2,16,256], index: 3, kind: output, shape index: {0}]   ;;  %s525_s4 = inlined_call_operand.vmem [shape: f32[2,16,256], index: 4, kind: output, shape index: {1}]   ;;  %s526_s5 = inlined_call_operand.vmem [shape: f32[2,16,256], index: 5, kind: output, shape index: {2}]  }
   0x1   :  { %12 = vsyncpa [#allocation5], 0  ;;  %s339_s18 = smov [#allocation2]  }
   0x2   :  { %s20_s19 = sshll.u32 %s339_s18, 4  ;;  %s21_s19 = int_to_ptr.vmem [resolvable:$true] %s20_s19 }
   0x3   :  { %s303_s20 = scalar_lea.vmem %s21_s19, 3072  ;;  %p308_p1 = scmp.lt.s32.totalorder %s21_s19, %s21_s19 }
   0x4   :  { %p304_p0 = scmp.ne.s32.totalorder %s21_s19, %s303_s20  ;;  %p309_p2 = scmp.lt.s32.totalorder %s303_s20, %s303_s20 }
   0x6   :  { %p310_p3 = por %p309_p2, %p308_p1 }
   0x8   :  { %p311_p4 = pnand %p310_p3, %p304_p0 }
   0xa   :  { %314 = shalt.err (!%p311_p4)
}
   0xb   :  { %s340_s21 = smov 256   ;;  %s341_s22 = smov 16  }
   0xc   :  { %26 = dma.hbm_to_vmem [thread:$0]  %s522_s1, 3072, %s21_s19, [#allocation3], %s340_s21, %s340_s21, %s341_s22  }
   0xd   :  { %s342_s25 = smov [#allocation4]  }
   0xe   :  { %s32_s26 = sshll.u32 %s342_s25, 4  ;;  %s33_s26 = int_to_ptr.vmem [resolvable:$true] %s32_s26 }
   0xf   :  { %s323_s27 = scalar_lea.vmem %s33_s26, 1536  ;;  %p328_p6 = scmp.lt.s32.totalorder %s33_s26, %s33_s26 }
  0x10   :  { %p324_p5 = scmp.ne.s32.totalorder %s33_s26, %s323_s27  ;;  %p329_p7 = scmp.lt.s32.totalorder %s323_s27, %s323_s27 }
  0x12   :  { %p330_p8 = por %p329_p7, %p328_p6 }
  0x14   :  { %p331_p9 = pnand %p330_p8, %p324_p5 }
  0x16   :  { %334 = shalt.err (!%p331_p9)
}
  0x17   :  { %38 = dma.hbm_to_vmem [thread:$0]  %s523_s2, 1536, %s33_s26, [#allocation5], %s340_s21, %s340_s21, %s341_s22  }
  0x18   :  { %335 = dma.done.wait [#allocation3], 3072  }
  0x19   :  { %336 = vsyncadd [#allocation3], 4294964224 }
  0x1a   :  { %337 = dma.done.wait [#allocation5], 1536  }
  0x1b   :  { %338 = vsyncadd [#allocation5], 4294965760  ;;  %v85_v0 = vlaneseq  ;;  %v45_v6 = vld [vmem:[%s521_s0] sm:$0xf]  ;;  %v48_v13 = vld [vmem:[#allocation2 + $0x8] sm:$0xff] }
  0x1c   :  { %v47_v7 = vld [vmem:[#allocation2] sm:$0xff]  ;;  %v52_v14 = vld [vmem:[#allocation2 + $0x28] sm:$0xff]  ;;  %v49_v15 = vld [vmem:[#allocation2 + $0x10] sm:$0xff] }
  0x1d   :  { %v86_v1 = vshrl.u32 %v85_v0, 7  ;;  %v51_v8 = vld [vmem:[#allocation2 + $0x20] sm:$0xff]  ;;  %v53_v20 = vld [vmem:[#allocation2 + $0x30] sm:$0xff]  ;;  %v50_v21 = vld [vmem:[#allocation2 + $0x18] sm:$0xff] }
  0x1e   :  { %v54_v22 = vld [vmem:[#allocation2 + $0x38] sm:$0xff]  ;;  %v71_v23 = vld [vmem:[#allocation4] sm:$0xff]  ;;  %v72_v24 = vld [vmem:[#allocation4 + $0x8] sm:$0xff] }
  0x1f   :  { %v87_v2 = vsub.s32 0, %v86_v1  ;;  %v139_v3 = vsub.s32 1, %v86_v1  ;;  %v91_v4 = vsub.s32 2, %v86_v1  ;;  %v143_v5 = vsub.s32 3, %v86_v1  ;;  %v46_v25 = vld [vmem:[%s521_s0 + $0x4] sm:$0xf] }
  0x20   :  { %v73_v30 = vld [vmem:[#allocation4 + $0x10] sm:$0xff]  ;;  %v74_v31 = vld [vmem:[#allocation4 + $0x18] sm:$0xff]  ;;  %v55_v52 = vld [vmem:[#allocation2 + $0x40] sm:$0xff] }
  0x21   :  { %v88_v9 = vrot.slane %v45_v6, %v87_v2  ;;  %v140_v10 = vrot.slane %v45_v6, %v139_v3  ;;  %v92_v11 = vrot.slane %v45_v6, %v91_v4  ;;  %v144_v12 = vrot.slane %v45_v6, %v143_v5  ;;  %v59_v53 = vld [vmem:[#allocation2 + $0x60] sm:$0xff]  ;;  %v56_v58 = vld [vmem:[#allocation2 + $0x48] sm:$0xff]  ;;  %v57_v1 = vld [vmem:[#allocation2 + $0x50] sm:$0xff] }
  0x22   :  { %v96_v38 = vrot.slane %v46_v25, %v87_v2  ;;  %v148_v39 = vrot.slane %v46_v25, %v139_v3  ;;  %v100_v42 = vrot.slane %v46_v25, %v91_v4  ;;  %v152_v43 = vrot.slane %v46_v25, %v143_v5  ;;  %v60_v59 = vld [vmem:[#allocation2 + $0x68] sm:$0xff]  ;;  %v75_v0 = vld [vmem:[#allocation4 + $0x20] sm:$0xff] }
  0x23   :  { %v382_v16 = vrot.slane %v88_v9, %v87_v2  ;;  %v384_v17 = vrot.slane %v140_v10, %v139_v3  ;;  %v386_v18 = vrot.slane %v92_v11, %v87_v2  ;;  %v388_v19 = vrot.slane %v144_v12, %v139_v3  ;;  %v76_v6 = vld [vmem:[#allocation4 + $0x28] sm:$0xff]  ;;  %v77_v12 = vld [vmem:[#allocation4 + $0x30] sm:$0xff] }
  0x24   :  { %v401_v46 = vrot.slane %v96_v38, %v87_v2  ;;  %v403_v47 = vrot.slane %v148_v39, %v139_v3  ;;  %v405_v50 = vrot.slane %v100_v42, %v87_v2  ;;  %v407_v51 = vrot.slane %v152_v43, %v139_v3 }
  0x25   :  { %v121_v26 = vmul.f32 %v382_v16, %v47_v7  ;;  %v173_v27 = vmul.f32 %v384_v17, %v51_v8  ;;  %v122_v28 = vmul.f32 %v386_v18, %v48_v13  ;;  %v174_v29 = vmul.f32 %v388_v19, %v52_v14 }
  0x26   :  { %v123_v32 = vmul.f32 %v382_v16, %v49_v15  ;;  %v175_v33 = vmul.f32 %v384_v17, %v53_v20  ;;  %v124_v34 = vmul.f32 %v386_v18, %v50_v21  ;;  %v176_v35 = vmul.f32 %v388_v19, %v54_v22 }
  0x27   :  { %v129_v36 = vadd.f32 %v121_v26, %v71_v23  ;;  %v130_v37 = vadd.f32 %v122_v28, %v72_v24  ;;  %v125_v54 = vmul.f32 %v401_v46, %v47_v7  ;;  %v177_v55 = vmul.f32 %v403_v47, %v51_v8  ;;  %v61_v7 = vld [vmem:[#allocation2 + $0x70] sm:$0xff]  ;;  %v78_v28 = vld [vmem:[#allocation4 + $0x38] sm:$0xff] }
  0x28   :  { %v131_v40 = vadd.f32 %v123_v32, %v73_v30  ;;  %v132_v41 = vadd.f32 %v124_v34, %v74_v31  ;;  %v127_v56 = vmul.f32 %v401_v46, %v49_v15  ;;  %v179_v57 = vmul.f32 %v403_v47, %v53_v20 }
  0x29   :  { %v181_v44 = vadd.f32 %v173_v27, %v129_v36  ;;  %v182_v45 = vadd.f32 %v174_v29, %v130_v37  ;;  %v126_v60 = vmul.f32 %v405_v50, %v48_v13  ;;  %v178_v61 = vmul.f32 %v407_v51, %v52_v14  ;;  %v58_v13 = vld [vmem:[#allocation2 + $0x58] sm:$0xff]  ;;  %v63_v36 = vld [vmem:[#allocation2 + $0x80] sm:$0xff] }
  0x2a   :  { %v183_v48 = vadd.f32 %v175_v33, %v131_v40  ;;  %v184_v49 = vadd.f32 %v176_v35, %v132_v41  ;;  %v128_v62 = vmul.f32 %v405_v50, %v50_v21  ;;  %v180_v63 = vmul.f32 %v407_v51, %v54_v22  ;;  %v62_v14 = vld [vmem:[#allocation2 + $0x78] sm:$0xff]  ;;  %v67_v41 = vld [vmem:[#allocation2 + $0xa0] sm:$0xff] }
  0x2b   :  { %189 = vst [vmem:[%s524_s3] sm:$0xff] %v181_v44  ;;  %190 = vst [vmem:[%s524_s3 + $0x8] sm:$0xff] %v182_v45  ;;  %v133_v2 = vadd.f32 %v125_v54, %v71_v23  ;;  %v135_v3 = vadd.f32 %v127_v56, %v73_v30  ;;  %v197_v4 = vmul.f32 %v382_v16, %v55_v52 }
  0x2c   :  { %191 = vst [vmem:[%s524_s3 + $0x10] sm:$0xff] %v183_v48  ;;  %192 = vst [vmem:[%s524_s3 + $0x18] sm:$0xff] %v184_v49  ;;  %v213_v5 = vmul.f32 %v384_v17, %v59_v53  ;;  %v134_v8 = vadd.f32 %v126_v60, %v72_v24  ;;  %v136_v9 = vadd.f32 %v128_v62, %v74_v31  ;;  %v79_v48 = vld [vmem:[#allocation4 + $0x40] sm:$0xff]  ;;  %v64_v49 = vld [vmem:[#allocation2 + $0x88] sm:$0xff] }
  0x2d   :  { %v198_v10 = vmul.f32 %v386_v18, %v56_v58  ;;  %v214_v11 = vmul.f32 %v388_v19, %v60_v59  ;;  %v185_v15 = vadd.f32 %v177_v55, %v133_v2  ;;  %v187_v20 = vadd.f32 %v179_v57, %v135_v3  ;;  %v65_v57 = vld [vmem:[#allocation2 + $0x90] sm:$0xff] }
  0x2e   :  { %v205_v21 = vadd.f32 %v197_v4, %v75_v0  ;;  %v199_v22 = vmul.f32 %v382_v16, %v57_v1  ;;  %v186_v23 = vadd.f32 %v178_v61, %v134_v8  ;;  %v188_v25 = vadd.f32 %v180_v63, %v136_v9 }
  0x2f   :  { %v206_v26 = vadd.f32 %v198_v10, %v76_v6  ;;  %v215_v27 = vmul.f32 %v384_v17, %v61_v7  ;;  %193 = vst [vmem:[%s524_s3 + $0x20] sm:$0xff] %v185_v15  ;;  %195 = vst [vmem:[%s524_s3 + $0x30] sm:$0xff] %v187_v20  ;;  %v200_v30 = vmul.f32 %v386_v18, %v58_v13 }
  0x30   :  { %v221_v24 = vadd.f32 %v213_v5, %v205_v21  ;;  %v207_v29 = vadd.f32 %v199_v22, %v77_v12  ;;  %v216_v31 = vmul.f32 %v388_v19, %v62_v14  ;;  %194 = vst [vmem:[%s524_s3 + $0x28] sm:$0xff] %v186_v23  ;;  %196 = vst [vmem:[%s524_s3 + $0x38] sm:$0xff] %v188_v25 }
  0x31   :  { %v222_v32 = vadd.f32 %v214_v11, %v206_v26  ;;  %v201_v33 = vmul.f32 %v401_v46, %v55_v52  ;;  %v217_v34 = vmul.f32 %v403_v47, %v59_v53  ;;  %v202_v35 = vmul.f32 %v405_v50, %v56_v58  ;;  %v68_v52 = vld [vmem:[#allocation2 + $0xa8] sm:$0xff]  ;;  %v69_v58 = vld [vmem:[#allocation2 + $0xb0] sm:$0xff] }
  0x32   :  { %229 = vst [vmem:[%s525_s4] sm:$0xff] %v221_v24  ;;  %v223_v37 = vadd.f32 %v215_v27, %v207_v29  ;;  %v208_v38 = vadd.f32 %v200_v30, %v78_v28  ;;  %v218_v39 = vmul.f32 %v407_v51, %v60_v59  ;;  %v203_v40 = vmul.f32 %v401_v46, %v57_v1  ;;  %v66_v59 = vld [vmem:[#allocation2 + $0x98] sm:$0xff] }
  0x33   :  { %230 = vst [vmem:[%s525_s4 + $0x8] sm:$0xff] %v222_v32  ;;  %v209_v42 = vadd.f32 %v201_v33, %v75_v0  ;;  %v210_v43 = vadd.f32 %v202_v35, %v76_v6  ;;  %v219_v44 = vmul.f32 %v403_v47, %v61_v7  ;;  %v204_v45 = vmul.f32 %v405_v50, %v58_v13  ;;  %v80_v0 = vld [vmem:[#allocation4 + $0x48] sm:$0xff]  ;;  %v70_v1 = vld [vmem:[#allocation2 + $0xb8] sm:$0xff]  ;;  %v81_v6 = vld [vmem:[#allocation4 + $0x50] sm:$0xff] }
  0x34   :  { %231 = vst [vmem:[%s525_s4 + $0x10] sm:$0xff] %v223_v37  ;;  %v224_v53 = vadd.f32 %v216_v31, %v208_v38  ;;  %v211_v54 = vadd.f32 %v203_v40, %v77_v12  ;;  %v220_v55 = vmul.f32 %v407_v51, %v62_v14  ;;  %v237_v56 = vmul.f32 %v382_v16, %v63_v36  ;;  %v82_v7 = vld [vmem:[#allocation4 + $0x58] sm:$0xff] }
  0x35   :  { %v225_v60 = vadd.f32 %v217_v34, %v209_v42  ;;  %v226_v61 = vadd.f32 %v218_v39, %v210_v43  ;;  %v212_v62 = vadd.f32 %v204_v45, %v78_v28  ;;  %v253_v63 = vmul.f32 %v384_v17, %v67_v41 }
  0x36   :  { %232 = vst [vmem:[%s525_s4 + $0x18] sm:$0xff] %v224_v53  ;;  %v227_v2 = vadd.f32 %v219_v44, %v211_v54  ;;  %v245_v3 = vadd.f32 %v237_v56, %v79_v48  ;;  %v238_v4 = vmul.f32 %v386_v18, %v64_v49  ;;  %v254_v5 = vmul.f32 %v388_v19, %v68_v52 }
  0x37   :  { %233 = vst [vmem:[%s525_s4 + $0x20] sm:$0xff] %v225_v60  ;;  %234 = vst [vmem:[%s525_s4 + $0x28] sm:$0xff] %v226_v61  ;;  %v228_v8 = vadd.f32 %v220_v55, %v212_v62  ;;  %v239_v9 = vmul.f32 %v382_v16, %v65_v57  ;;  %v255_v10 = vmul.f32 %v384_v17, %v69_v58 }
  0x38   :  { %v240_v11 = vmul.f32 %v386_v18, %v66_v59  ;;  %235 = vst [vmem:[%s525_s4 + $0x30] sm:$0xff] %v227_v2  ;;  %v261_v12 = vadd.f32 %v253_v63, %v245_v3  ;;  %v246_v13 = vadd.f32 %v238_v4, %v80_v0  ;;  %v256_v14 = vmul.f32 %v388_v19, %v70_v1 }
  0x39   :  { %v241_v15 = vmul.f32 %v401_v46, %v63_v36  ;;  %236 = vst [vmem:[%s525_s4 + $0x38] sm:$0xff] %v228_v8  ;;  %v247_v20 = vadd.f32 %v239_v9, %v81_v6  ;;  %v257_v17 = vmul.f32 %v403_v47, %v67_v41  ;;  %v242_v18 = vmul.f32 %v405_v50, %v64_v49 }
  0x3a   :  { %v248_v16 = vadd.f32 %v240_v11, %v82_v7  ;;  %269 = vst [vmem:[%s526_s5] sm:$0xff] %v261_v12  ;;  %v262_v21 = vadd.f32 %v254_v5, %v246_v13  ;;  %v258_v19 = vmul.f32 %v407_v51, %v68_v52  ;;  %v243_v23 = vmul.f32 %v401_v46, %v65_v57 }
  0x3b   :  { %v249_v22 = vadd.f32 %v241_v15, %v79_v48  ;;  %v263_v25 = vadd.f32 %v255_v10, %v247_v20  ;;  %v250_v27 = vadd.f32 %v242_v18, %v80_v0  ;;  %v259_v28 = vmul.f32 %v403_v47, %v69_v58 }
  0x3c   :  { %v264_v26 = vadd.f32 %v256_v14, %v248_v16  ;;  %270 = vst [vmem:[%s526_s5 + $0x8] sm:$0xff] %v262_v21  ;;  %v251_v29 = vadd.f32 %v243_v23, %v81_v6  ;;  %v244_v30 = vmul.f32 %v405_v50, %v66_v59  ;;  %v260_v31 = vmul.f32 %v407_v51, %v70_v1 }
  0x3d   :  { %v265_v24 = vadd.f32 %v257_v17, %v249_v22  ;;  %271 = vst [vmem:[%s526_s5 + $0x10] sm:$0xff] %v263_v25  ;;  %v266_v46 = vadd.f32 %v258_v19, %v250_v27 }
  0x3e   :  { %272 = vst [vmem:[%s526_s5 + $0x18] sm:$0xff] %v264_v26  ;;  %v267_v47 = vadd.f32 %v259_v28, %v251_v29  ;;  %v252_v32 = vadd.f32 %v244_v30, %v82_v7 }
  0x3f   :  { %273 = vst [vmem:[%s526_s5 + $0x20] sm:$0xff] %v265_v24  ;;  %274 = vst [vmem:[%s526_s5 + $0x28] sm:$0xff] %v266_v46 }
  0x40   :  { %275 = vst [vmem:[%s526_s5 + $0x30] sm:$0xff] %v267_v47  ;;  %v268_v50 = vadd.f32 %v260_v31, %v252_v32 }
  0x42   :  { %276 = vst [vmem:[%s526_s5 + $0x38] sm:$0xff] %v268_v50 }
  0x43   :  { %289 = vsyncpa [#allocation3], 1 }
  0x44   :  { %290 = vsyncpa [#allocation5], 1 }

</bundles_post_ra>
